<compile_context>
chip_gen: v7x
topology: tpu7x:2x2x1
jax: 0.10.0
libtpu: 0.0.40
codegen_flags: <defaults>
</compile_context>

<pallas_src>
import functools

import jax
import jax.numpy as jnp
from jax import lax
from jax.experimental import pallas as pl
from jax.experimental.pallas import tpu as pltpu


def _layernorm_kernel(x_ref, gamma_ref, beta_ref, o_ref, *, eps):
    # x_ref: (tm, D) tile of rows; gamma/beta: (1, D) f32, VMEM-resident.
    x = x_ref[...].astype(jnp.float32)
    mean = jnp.mean(x, axis=-1, keepdims=True)
    xc = x - mean                                     # centered value, reused
    var = jnp.mean(xc * xc, axis=-1, keepdims=True)   # population variance (/D)
    inv = lax.rsqrt(var + eps)                        # EUP rsqrt, off the VALU
    o_ref[...] = (gamma_ref[...] * (xc * inv) + beta_ref[...]).astype(o_ref.dtype)


def _row_alignment(dtype) -> int:
    itemsize = jnp.dtype(dtype).itemsize
    if itemsize >= 4:
        return 8       # f32: one vreg = [8, 128]
    if itemsize == 2:
        return 16      # bf16: packed vreg = [16, 128]
    return 32          # int8 / fp8


def _round_up(n, m):
    return ((n + m - 1) // m) * m


# Cross-generation VMEM budget:
#   - request a 48 MiB scoped limit: fits v7x's 64 MiB physical with headroom,
#     comfortably inside v5e/v6e's 128 MiB physical.
#   - of that, allow ~40 MiB for tile buffers + in-kernel f32 temporaries.
_VMEM_LIMIT_BYTES = 48 << 20
_TILE_BUDGET_BYTES = 40 << 20
# Cap the input tile around 6 MiB: past that, per-step overhead (~0.35 us) is
# already <10% of step time on every generation; bigger only adds VMEM pressure.
_MAX_IN_TILE_BYTES = 6 << 20
_NUM_F32_TEMPS = 3  # x.astype(f32), xc, (gamma*y+beta) before the output cast


def layer_norm(x, gamma, beta, *, eps=1e-12):
    """LayerNorm over the last axis of x. x: (..., D); gamma, beta: (D,)."""
    orig_shape = x.shape
    D = orig_shape[-1]
    x2 = x.reshape(-1, D)
    N = x2.shape[0]

    in_itemsize = jnp.dtype(x.dtype).itemsize
    align = _row_alignment(x.dtype)

    # Per-row VMEM cost: double-buffered input + double-buffered output (same
    # dtype) + the f32 temporaries the kernel body materializes.
    per_row_bytes = D * (2 * in_itemsize + 2 * in_itemsize + _NUM_F32_TEMPS * 4)
    tm_budget = _TILE_BUDGET_BYTES // per_row_bytes
    tm_cap = max(1, _MAX_IN_TILE_BYTES // (D * in_itemsize))
    tm = (min(tm_budget, tm_cap) // align) * align

    if tm < align:
        # Even the minimum aligned row tile does not fit the VMEM budget.
        # TODO(synk): add a D-tiling fallback (grid axis over D marked
        # "arbitrary" with running sum / sum-of-squares accumulators followed
        # by a normalize pass) for very large feature dimensions.
        raise NotImplementedError(
            f"LayerNorm feature dim D={D} too large for single-axis row tiling."
        )

    # Parameters resident in VMEM as (1, D) f32 — cast once on the host.
    gamma2 = gamma.reshape(1, D).astype(jnp.float32)
    beta2 = beta.reshape(1, D).astype(jnp.float32)

    kernel = functools.partial(_layernorm_kernel, eps=eps)

    if N < 2 * align:
        # Too few rows to split into two aligned tiles: one block covering the
        # whole array (block == full array dims, no (8,128) requirement).
        tm = N
        grid = (1,)
    else:
        # Guarantee >= 2 grid steps so dimension_semantics=("parallel",) can
        # shard rows across v7x's two TensorCores; neutral on v5e/v6e.
        if pl.cdiv(N, tm) < 2:
            tm = _round_up(pl.cdiv(N, 2), align)
        # Ragged last block is read-padded / write-masked by Pallas; rows are
        # independent so padded rows never affect valid outputs.
        grid = (pl.cdiv(N, tm),)

    out = pl.pallas_call(
        kernel,
        out_shape=jax.ShapeDtypeStruct((N, D), x.dtype),
        grid_spec=pltpu.PrefetchScalarGridSpec(
            num_scalar_prefetch=0,
            grid=grid,
            in_specs=[
                pl.BlockSpec((tm, D), lambda i: (i, 0)),
                pl.BlockSpec((1, D), lambda i: (0, 0)),
                pl.BlockSpec((1, D), lambda i: (0, 0)),
            ],
            out_specs=pl.BlockSpec((tm, D), lambda i: (i, 0)),
        ),
        compiler_params=pltpu.CompilerParams(
            dimension_semantics=("parallel",),
            vmem_limit_bytes=_VMEM_LIMIT_BYTES,
        ),
    )(x2, gamma2, beta2)

    return out.reshape(orig_shape)


if __name__ == "__main__":
    # Small shapes consistent with the module spec (d_model = 512).
    B, S, D = 8, 32, 512
    key = jax.random.PRNGKey(0)
    x = jax.random.uniform(key, (B, S, D), dtype=jnp.float32)

    # Same init as nn.Parameter(torch.ones/zeros(d_model)); eps matches module.
    gamma = jnp.ones((D,), dtype=jnp.float32)
    beta = jnp.zeros((D,), dtype=jnp.float32)
    eps = 1e-12

    out = layer_norm(x, gamma, beta, eps=eps)
    out = jax.block_until_ready(out)

    # Reference check in plain JAX (population variance, matching unbiased=False).
    mean = jnp.mean(x, axis=-1, keepdims=True)
    var = jnp.mean((x - mean) ** 2, axis=-1, keepdims=True)
    ref = gamma * ((x - mean) / jnp.sqrt(var + eps)) + beta
    assert out.shape == x.shape
    assert jnp.allclose(out, ref, atol=1e-5, rtol=1e-5)

    print("KERNEL_OK")
</pallas_src>

<mosaic_0001>
module attributes {stable_mosaic.version = 11 : i64} {
  func.func @_layernorm_kernel(%arg0: i32, %arg1: memref<128x512xf32, #tpu.memory_space<vmem>>, %arg2: memref<1x512xf32, #tpu.memory_space<vmem>>, %arg3: memref<1x512xf32, #tpu.memory_space<vmem>>, %arg4: memref<128x512xf32, #tpu.memory_space<vmem>>) attributes {dimension_semantics = [#tpu.dimension_semantics<parallel>], iteration_bounds = array<i64: 2>, scalar_prefetch = 0 : i64, scratch_operands = 0 : i64, tpu.core_type = #tpu.core_type<tc>, window_params = [{transform_indices = @transform_0, window_bounds = array<i64: 128, 512>}, {pipeline_mode = #tpu.pipeline_mode<synchronous>, transform_indices = @transform_1, window_bounds = array<i64: 1, 512>}, {pipeline_mode = #tpu.pipeline_mode<synchronous>, transform_indices = @transform_2, window_bounds = array<i64: 1, 512>}, {transform_indices = @transform_3, window_bounds = array<i64: 128, 512>}]} {
    %c0 = arith.constant 0 : index
    %c0_0 = arith.constant 0 : index
    %0 = vector.load %arg1[%c0, %c0_0] : memref<128x512xf32, #tpu.memory_space<vmem>>, vector<128x512xf32>
    %cst = arith.constant dense<0.000000e+00> : vector<128xf32>
    %1 = vector.multi_reduction <add>, %0, %cst [1] : vector<128x512xf32> to vector<128xf32>
    %2 = vector.shape_cast %1 : vector<128xf32> to vector<128x1xf32>
    %cst_1 = arith.constant 5.120000e+02 : f32
    %3 = vector.broadcast %cst_1 : f32 to vector<128x1xf32>
    %4 = arith.divf %2, %3 : vector<128x1xf32>
    %5 = vector.broadcast %4 : vector<128x1xf32> to vector<128x512xf32>
    %6 = arith.subf %0, %5 : vector<128x512xf32>
    %7 = arith.mulf %6, %6 : vector<128x512xf32>
    %cst_2 = arith.constant dense<0.000000e+00> : vector<128xf32>
    %8 = vector.multi_reduction <add>, %7, %cst_2 [1] : vector<128x512xf32> to vector<128xf32>
    %9 = vector.shape_cast %8 : vector<128xf32> to vector<128x1xf32>
    %cst_3 = arith.constant 5.120000e+02 : f32
    %10 = vector.broadcast %cst_3 : f32 to vector<128x1xf32>
    %11 = arith.divf %9, %10 : vector<128x1xf32>
    %cst_4 = arith.constant 9.99999996E-13 : f32
    %12 = vector.broadcast %cst_4 : f32 to vector<128x1xf32>
    %13 = arith.addf %11, %12 : vector<128x1xf32>
    %14 = math.rsqrt %13 : vector<128x1xf32>
    %c0_5 = arith.constant 0 : index
    %c0_6 = arith.constant 0 : index
    %15 = vector.load %arg2[%c0_5, %c0_6] : memref<1x512xf32, #tpu.memory_space<vmem>>, vector<1x512xf32>
    %16 = vector.broadcast %14 : vector<128x1xf32> to vector<128x512xf32>
    %17 = arith.mulf %6, %16 : vector<128x512xf32>
    %18 = vector.broadcast %15 : vector<1x512xf32> to vector<128x512xf32>
    %19 = arith.mulf %18, %17 : vector<128x512xf32>
    %c0_7 = arith.constant 0 : index
    %c0_8 = arith.constant 0 : index
    %20 = vector.load %arg3[%c0_7, %c0_8] : memref<1x512xf32, #tpu.memory_space<vmem>>, vector<1x512xf32>
    %21 = vector.broadcast %20 : vector<1x512xf32> to vector<128x512xf32>
    %22 = arith.addf %19, %21 : vector<128x512xf32>
    %c0_9 = arith.constant 0 : index
    %c0_10 = arith.constant 0 : index
    %23 = vector.load %arg4[%c0_9, %c0_10] : memref<128x512xf32, #tpu.memory_space<vmem>>, vector<128x512xf32>
    tpu.vector_store %arg4[%c0_9, %c0_10], %22 {strides = array<i32>} : memref<128x512xf32, #tpu.memory_space<vmem>>, vector<128x512xf32>,
    return
  }
  func.func @transform_0(%arg0: i32) -> (i32, i32) {
    %c0_i32 = arith.constant 0 : i32
    %c0_i32_0 = arith.constant 0 : i32
    return %arg0, %c0_i32 : i32, i32
  }
  func.func @transform_1(%arg0: i32) -> (i32, i32) {
    %c0_i32 = arith.constant 0 : i32
    %c0_i32_0 = arith.constant 0 : i32
    %c0_i32_1 = arith.constant 0 : i32
    return %c0_i32, %c0_i32_0 : i32, i32
  }
  func.func @transform_2(%arg0: i32) -> (i32, i32) {
    %c0_i32 = arith.constant 0 : i32
    %c0_i32_0 = arith.constant 0 : i32
    %c0_i32_1 = arith.constant 0 : i32
    return %c0_i32, %c0_i32_0 : i32, i32
  }
  func.func @transform_3(%arg0: i32) -> (i32, i32) {
    %c0_i32 = arith.constant 0 : i32
    %c0_i32_0 = arith.constant 0 : i32
    return %arg0, %c0_i32 : i32, i32
  }
}

</mosaic_0001>

<bundles_post_ra>
// kernel: tpu_custom_call.1
= control target key start
LH: loop header
LB: loop body
LE: loop exit
PB: predicated region body
PF: predicated region fallthrough
CT: control target
= control target key end

     0   :  { %8 = vsyncpa [#allocation3], 0  ;;  %s2431_s0 = inlined_call_operand.hbm [shape: f32[256,512], index: 0, kind: input, shape index: {}]   ;;  %s2432_s1 = inlined_call_operand.hbm [shape: f32[1,512], index: 1, kind: input, shape index: {}]   ;;  %s2433_s2 = inlined_call_operand.vmem [shape: f32[1,512], index: 2, kind: input, shape index: {}]   ;;  %s2434_s3 = inlined_call_operand.hbm [shape: f32[256,512], index: 3, kind: output, shape index: {}]  }
   0x1   :  { %10 = vsyncpa [#allocation3 + $0x1], 0 }
   0x2   :  { %11 = vsyncpa [#allocation6], 0 }
   0x3   :  { %12 = vsyncpa [#allocation4], 0 }
   0x4   :  { %14 = vsyncpa [#allocation4 + $0x1], 0  ;;  %s1292_s12 = smov 0   ;;  %s1294_s13 = smov 0  }
   0x5   :  { %s1296_s14 = smov 0   ;;  %s1298_s15 = smov 0  }
   0x6 LB: > { %s1313_s16 = sadd.s32 4294967295, %s1263_s15   ;;  %s1020_s17 = sadd.s32 4294967294, %s1263_s15   ;;  %s1263_s15 = sphi %s1298_s15, %s2582_s15   ;;  %s1259_s14 = sphi %s1296_s14, %s2581_s14   ;;  %s1255_s13 = sphi %s1294_s13, %s2580_s13   ;;  %s1251_s12 = sphi %s1292_s12, %s2579_s12  }
   0x7   : > { %s1317_s18 = sadd.s32 1, %s1263_s15   ;;  %s27_s19 = sadd.s32 1, %s1259_s14 }
   0x8   : > { %s24_s20 = ssub.s32 %s1263_s15, %s1317_s18  ;;  %p34_p0 = scmp.ne.s32.totalorder %s1259_s14, %s1255_s13 }
   0x9   : > { %p25_p1 = scmp.eq.s32.totalorder %s24_s20, 0  ;;  %p35_p2 = scmp.eq.s32.totalorder %s1263_s15, 0 }
   0xa   : > { %p40_p3 = scmp.ne.s32.totalorder %s1255_s13, %s1251_s12  ;;  %p2435_p4 = scmp.eq.s32.totalorder %s1313_s16, 0 }
   0xb   : > { %s1329_s21 = scalar_select %p25_p1, %s1259_s14, %s27_s19  }
   0xc   : > { %p1331_p5 = por %p35_p2, %p34_p0  ;;  %p1337_p6 = por %p2435_p4, %p40_p3 }
   0xd   : > { %p106_p7 = scmp.eq.s32.totalorder %s1313_s16, 1  ;;  %p112_p8 = scmp.eq.s32.totalorder %s1020_s17, 1 }
   0xe   : > { %s2482_s23 = scalar_select %p1337_p6, 1, 0 }
   0xf   : > { %p1021_p9 = scmp.ge.s32.totalorder %s1263_s15, 1  ;;  %p119_p10 = scmp.lt.s32.totalorder %s1263_s15, 3 }
  0x10   : > { %p1344_p11 = por %p106_p7, %p34_p0  ;;  %p1348_p12 = por %p112_p8, %p40_p3 }
  0x11   : > { %p1352_p13 = pnand %p1021_p9, %p119_p10  ;;  %s1265_s27 = smov [#allocation5]  }
  0x12   : > { %s2483_s24 = scalar_select %p1344_p11, 1, 0 }
  0x13   : > { %s2484_s25 = scalar_select %p1348_p12, 1, 0 }
  0x14   : > { %s2485_s26 = scalar_select %p1352_p13, 1, 0 }
  0x15   : > { %p1050_p2 = pneg %p1352_p13  ;;  %s132_s28 = sshll.u32 %s1265_s27, 4  ;;  %s133_s28 = int_to_ptr.vmem [resolvable:$true] %s132_s28 }
  0x16   : > { %p1063_p4 = scmp.lt.s32.totalorder %s1263_s15, 2  ;;  %p2486_p0 = scmp.eq.s32.totalorder %s1313_s16, 0 }
  0x17   : > { %s146_s30 = sand.u32 1, %s1259_s14   ;;  %s1135_s8 = scalar_lea.hbm %s2432_s1, 64 }
  0x18   : > { %p1362_p7 = pnand %p1050_p2, %p2486_p0  ;;  %p1369_p3 = pnand %p1063_p4, %p1331_p5 }
  0x19   : > { %s1024_s5 = sshll.u32 %s146_s30, 9  ;;  %p1136_p8 = scmp.ne.s32.totalorder %s2432_s1, %s1135_s8 }
  0x1a   : > { %s2488_s4 = scalar_select %p1369_p3, 1, 0 }
  0x1b   : > { %p1137_p9 = pneg %p1362_p7  ;;  %p1142_p4 = scmp.lt.u32.totalorder %s1135_s8, %s2432_s1 }
  0x1d   : > { %p1138_p10 = pnand %p1137_p9, %p1136_p8 }
  0x1f   : > { %p1139_p2 = pneg %p1138_p10 }
  0x21   : > { %p1144_p5 = pnand %p1142_p4, %p1139_p2 }
  0x23   : > { %1147 = shalt.err (!%p1144_p5)
}
  0x24   : > { %s1148_s19 = scalar_lea.vmem %s133_s28, 64  ;;  %p1156_p11 = scmp.lt.s32.totalorder %s133_s28, %s133_s28 }
  0x25   : > { %p1149_p0 = scmp.ne.s32.totalorder %s133_s28, %s1148_s19  ;;  %p1157_p6 = scmp.lt.s32.totalorder %s1148_s19, %s1148_s19 }
  0x27   : > { %p1151_p1 = pnand %p1149_p0, %p1137_p9  ;;  %p1158_p13 = por %p1157_p6, %p1156_p11 }
  0x29   : > { %p1152_p12 = pneg %p1151_p1 }
  0x2b   : > { %p1159_p3 = pnand %p1158_p13, %p1152_p12 }
  0x2d   : > { %1162 = shalt.err (!%p1159_p3)
}
  0x2e   : > { %1053 = dma.hbm_to_vmem [thread:$0]  (!%p1362_p7), %s2432_s1, 64, %s133_s28, [#allocation6]  }
  0x2f   : > { %s1039_s27 = sshll.u32 %s1263_s15, 13  ;;  %s150_s6 = scalar_lea.vmem [#allocation2], %s1024_s5 }
  0x30   : > { %s158_s7 = sshll.u32 %s150_s6, 4  ;;  %s1393_s10 = scalar_lea.hbm %s2431_s0, %s1039_s27  ;;  %s1395_s7 = int_to_ptr.vmem [resolvable:$true] %s158_s7 }
  0x31   : > { %s1397_s29 = scalar_lea.sflag [#allocation3], %s146_s30  ;;  %s1163_s11 = scalar_lea.hbm %s1393_s10, 8192 }
  0x32   : > { %p1164_p6 = scmp.ne.s32.totalorder %s1393_s10, %s1163_s11  ;;  %p2489_p11 = scmp.ne.s32.totalorder %s2488_s4, 0 }
  0x33   : > { %s1168_s17 = scalar_lea.hbm %s2431_s0, 16384  ;;  %p1169_p7 = scmp.lt.u32.totalorder %s1393_s10, %s2431_s0 }
  0x34   : > { %p1165_p12 = pneg %p2489_p11  ;;  %p1170_p3 = scmp.lt.u32.totalorder %s1168_s17, %s1163_s11 }
  0x35   : > { %p1172_p9 = scmp.lt.u32.totalorder %s1163_s11, %s1393_s10 }
  0x36   : > { %p1166_p13 = pnand %p1165_p12, %p1164_p6  ;;  %p1171_p8 = por %p1170_p3, %p1169_p7 }
  0x38   : > { %p1167_p1 = pneg %p1166_p13  ;;  %p1173_p10 = por %p1172_p9, %p1171_p8 }
  0x3a   : > { %p1174_p2 = pnand %p1173_p10, %p1167_p1 }
  0x3c   : > { %1177 = shalt.err (!%p1174_p2)
}
  0x3d   : > { %s1178_s30 = scalar_lea.vmem %s1395_s7, 8192  ;;  %s1266_s22 = smov [#allocation2]  }
  0x3e   : > { %p1179_p4 = scmp.ne.s32.totalorder %s1395_s7, %s1178_s30  ;;  %s1183_s27 = sshll.u32 %s1266_s22, 4  ;;  %s1184_s27 = int_to_ptr.vmem [resolvable:$false] %s1183_s27 }
  0x3f   : > { %s1185_s6 = scalar_lea.vmem %s1184_s27, 16384  ;;  %p1186_p6 = scmp.lt.s32.totalorder %s1395_s7, %s1184_s27 }
  0x40   : > { %p1181_p5 = pnand %p1179_p4, %p1165_p12  ;;  %p1187_p13 = scmp.lt.s32.totalorder %s1185_s6, %s1178_s30 }
  0x42   : > { %p1182_p0 = pneg %p1181_p5  ;;  %p1188_p7 = por %p1187_p13, %p1186_p6 }
  0x44   : > { %p1189_p3 = pnand %p1188_p7, %p1182_p0 }
  0x46   : > { %1192 = shalt.err (!%p1189_p3)
}
  0x47   : > { %s1267_s8 = smov 512   ;;  %s1268_s9 = smov 32  }
  0x48   : > { %1057 = dma.hbm_to_vmem [thread:$0]  (!%p2489_p11), %s1393_s10, 8192, %s1395_s7, %s1397_s29, %s1267_s8, %s1267_s8, %s1268_s9  }
  0x49   : > { %p2490_p12 = scmp.ne.s32.totalorder %s2485_s26, 0 }
  0x4b   : > { %170 = sbr.rel (%p2490_p12) target bundleno = 494 (0x1ee), region = 32 }
  0x52   : > { %s1428_s11 = sand.u32 1, %s1255_s13   ;;  %p2491_p1 = scmp.ne.s32.totalorder %s2482_s23, 0 }
  0x53   : > { %s1029_s28 = sshll.u32 %s1428_s11, 9  ;;  %s173_s5 = scalar_lea.sflag [#allocation3], %s1428_s11 }
  0x54   : > { %s1434_s17 = scalar_lea.vmem [#allocation2], %s1029_s28 }
  0x55   : > { %1238 = dma.done.wait (%p2491_p1), %s173_s5, 8192  }
  0x56   : > { %1240 = vsyncadd (%p2491_p1), %s173_s5, 4294959104  ;;  %p2492_p11 = scmp.eq.s32.totalorder %s1313_s16, 0 }
  0x58   : > { %1242 = dma.done.wait (%p2492_p11), [#allocation6], 64   ;;  %p2493_p8 = pmov %p2492_p11 }
  0x59   : > { %v1445_v0 = vld [vmem:[%s1434_s17 + $0x40] sm:$0xff]  ;;  %v1448_v1 = vld [vmem:[%s1434_s17 + $0x48] sm:$0xff]  ;;  %v1451_v2 = vld [vmem:[%s1434_s17 + $0x50] sm:$0xff]  ;;  %s2109_s4 = scalar_lea.vmem [#allocation7], %s1029_s28  ;;  %s1041_s7 = sshll.u32 %s1313_s16, 13 }
  0x5a   : > { %1244 = vsyncadd (%p2493_p8), [#allocation6], 4294967232  ;;  %v279_v3 = vadd.f32 %v1448_v1, %v1445_v0  ;;  %v1456_v4 = vld [vmem:[%s1434_s17] sm:$0xff]  ;;  %v1459_v5 = vld [vmem:[%s1434_s17 + $0x8] sm:$0xff]  ;;  %s937_s10 = sshll.u32 %s2109_s4, 4  ;;  %s2377_s20 = scalar_lea.hbm %s2434_s3, %s1041_s7  ;;  %s2379_s10 = int_to_ptr.vmem [resolvable:$true] %s937_s10 }
  0x5b   : > { %v1462_v6 = vld [vmem:[%s1434_s17 + $0x58] sm:$0xff]  ;;  %v1465_v7 = vld [vmem:[%s1434_s17 + $0x10] sm:$0xff]  ;;  %v269_v8 = vadd.f32 %v1459_v5, %v1456_v4  ;;  %v1470_v9 = vld [vmem:[%s1434_s17 + $0x60] sm:$0xff]  ;;  %s923_s16 = scalar_lea.sflag [#allocation4], %s1428_s11  ;;  %s1193_s30 = scalar_lea.vmem %s2379_s10, 8192 }
  0x5c   : > { %v280_v10 = vadd.f32 %v279_v3, %v1451_v2  ;;  %v1474_v11 = vld [vmem:[%s1434_s17 + $0x18] sm:$0xff]  ;;  %v1477_v12 = vld [vmem:[%s1434_s17 + $0x68] sm:$0xff]  ;;  %v1480_v13 = vld [vmem:[%s1434_s17 + $0x70] sm:$0xff]  ;;  %p1194_p9 = scmp.ne.s32.totalorder %s2379_s10, %s1193_s30  ;;  %p2576_p10 = scmp.ne.s32.totalorder %s2483_s24, 0 }
  0x5d   : > { %v270_v14 = vadd.f32 %v269_v8, %v1465_v7  ;;  %v284_v15 = vadd.f32 %v1477_v12, %v1470_v9  ;;  %v1486_v16 = vld [vmem:[%s1434_s17 + $0x20] sm:$0xff]  ;;  %v1489_v17 = vld [vmem:[%s1434_s17 + $0x28] sm:$0xff]  ;;  %v1492_v18 = vld [vmem:[%s1434_s17 + $0x30] sm:$0xff]  ;;  %s1269_s22 = smov [#allocation7]  }
  0x5e   : > { %v281_v19 = vadd.f32 %v280_v10, %v1462_v6  ;;  %v1496_v20 = vld [vmem:[%s1434_s17 + $0x78] sm:$0xff]  ;;  %v274_v21 = vadd.f32 %v1489_v17, %v1486_v16  ;;  %v1501_v22 = vld [vmem:[%s1434_s17 + $0xa0] sm:$0xff]  ;;  %v1504_v23 = vld [vmem:[%s1434_s17 + $0xa8] sm:$0xff]  ;;  %p1195_p2 = pnand %p1194_p9, %p2576_p10  ;;  %s1197_s27 = sshll.u32 %s1269_s22, 4  ;;  %s1198_s27 = int_to_ptr.vmem [resolvable:$false] %s1197_s27 }
  0x5f   : > { %v271_v24 = vadd.f32 %v270_v14, %v1474_v11  ;;  %v285_v25 = vadd.f32 %v284_v15, %v1480_v13  ;;  %v1509_v26 = vld [vmem:[%s1434_s17 + $0x38] sm:$0xff]  ;;  %v1512_v27 = vld [vmem:[%s1434_s17 + $0xb0] sm:$0xff]  ;;  %v294_v28 = vadd.f32 %v1504_v23, %v1501_v22  ;;  %v1517_v29 = vld [vmem:[%s1434_s17 + $0x80] sm:$0xff]  ;;  %s1199_s6 = scalar_lea.vmem %s1198_s27, 16384  ;;  %p1200_p5 = scmp.lt.s32.totalorder %s2379_s10, %s1198_s27 }
  0x60   : > { %282 = vadd.xlane.f32.xlu1 %v281_v19  ;;  %v275_v30 = vadd.f32 %v274_v21, %v1492_v18  ;;  %v1521_v31 = vld [vmem:[%s1434_s17 + $0xb8] sm:$0xff]  ;;  %v1524_v32 = vld [vmem:[%s1434_s17 + $0x88] sm:$0xff]  ;;  %v1527_v33 = vld [vmem:[%s1434_s17 + $0x90] sm:$0xff]  ;;  %p1196_p4 = pneg %p1195_p2  ;;  %p1201_p0 = scmp.lt.s32.totalorder %s1199_s6, %s1193_s30 }
  0x61   : > { %272 = vadd.xlane.f32.xlu0 %v271_v24  ;;  %v286_v34 = vadd.f32 %v285_v25, %v1496_v20  ;;  %v295_v35 = vadd.f32 %v294_v28, %v1512_v27  ;;  %v289_v36 = vadd.f32 %v1524_v32, %v1517_v29  ;;  %v1534_v37 = vld [vmem:[%s1434_s17 + $0xe0] sm:$0xff]  ;;  %v1537_v38 = vld [vmem:[%s1434_s17 + $0xe8] sm:$0xff]  ;;  %v1540_v39 = vld [vmem:[%s1434_s17 + $0xf0] sm:$0xff] }
  0x62   : > { %v276_v40 = vadd.f32 %v275_v30, %v1509_v26  ;;  %v1544_v41 = vld [vmem:[%s1434_s17 + $0x98] sm:$0xff]  ;;  %v304_v42 = vadd.f32 %v1537_v38, %v1534_v37  ;;  %v1549_v43 = vld [vmem:[%s1434_s17 + $0xc0] sm:$0xff]  ;;  %v1552_v44 = vld [vmem:[%s1434_s17 + $0xc8] sm:$0xff]  ;;  %p1202_p6 = por %p1201_p0, %p1200_p5 }
  0x63   : > { %v290_v45 = vadd.f32 %v289_v36, %v1527_v33  ;;  %v1556_v46 = vld [vmem:[%s1434_s17 + $0xd0] sm:$0xff]  ;;  %v299_v47 = vadd.f32 %v1552_v44, %v1549_v43  ;;  %v1561_v48 = vld [vmem:[%s1434_s17 + $0x120] sm:$0xff]  ;;  %v296_v49 = vadd.f32 %v295_v35, %v1521_v31  ;;  %v1565_v50 = vld [vmem:[%s1434_s17 + $0xf8] sm:$0xff] }
  0x64   : > { %287 = vadd.xlane.f32.xlu1 %v286_v34  ;;  %2494 = vst [vmem:[#allocation11_spill] sm:$0xff] %v1565_v50  ;;  %v305_v51 = vadd.f32 %v304_v42, %v1540_v39  ;;  %v1569_v52 = vld [vmem:[%s1434_s17 + $0xd8] sm:$0xff]  ;;  %v1572_v53 = vld [vmem:[%s1434_s17 + $0x128] sm:$0xff]  ;;  %v1577_v56 = vld [vmem:[%s1434_s17 + $0x130] sm:$0xff]  ;;  %p1203_p13 = pnand %p1202_p6, %p1196_p4 }
  0x65   : > { %277 = vadd.xlane.f32.xlu0 %v276_v40  ;;  %v291_v54 = vadd.f32 %v290_v45, %v1544_v41  ;;  %v300_v55 = vadd.f32 %v299_v47, %v1556_v46  ;;  %2495 = vst [vmem:[#allocation12_spill] sm:$0xff] %v1577_v56  ;;  %v314_v57 = vadd.f32 %v1572_v53, %v1561_v48  ;;  %v1582_v58 = vld [vmem:[%s1434_s17 + $0x100] sm:$0xff]  ;;  %v1585_v59 = vld [vmem:[%s1434_s17 + $0x108] sm:$0xff]  ;;  %v1588_v60 = vld [vmem:[%s1434_s17 + $0x110] sm:$0xff] }
  0x66   : > { %2496 = vst [vmem:[#allocation13_spill] sm:$0xff] %v1588_v60  ;;  %v309_v61 = vadd.f32 %v1585_v59, %v1582_v58  ;;  %v1593_v62 = vld [vmem:[%s1434_s17 + $0x160] sm:$0xff]  ;;  %v1596_v63 = vld [vmem:[%s1434_s17 + $0x168] sm:$0xff]  ;;  %v306_v8 = vadd.f32 %v305_v51, %v1565_v50  ;;  %v1603_v10 = vld [vmem:[%s1434_s17 + $0x138] sm:$0xff] }
  0x67   : > { %v1599_v3 = vld [vmem:[%s1434_s17 + $0x140] sm:$0xff]  ;;  %2497 = vst [vmem:[#allocation14_spill] sm:$0xff] %v1603_v10  ;;  %v315_v14 = vadd.f32 %v314_v57, %v1577_v56  ;;  %v1607_v15 = vld [vmem:[%s1434_s17 + $0x118] sm:$0xff]  ;;  %v324_v19 = vadd.f32 %v1596_v63, %v1593_v62  ;;  %v1612_v21 = vld [vmem:[%s1434_s17 + $0x148] sm:$0xff]  ;;  %v301_v24 = vadd.f32 %v300_v55, %v1569_v52 }
  0x68   : > { %297 = vadd.xlane.f32.xlu1 %v296_v49  ;;  %2498 = vst [vmem:[#allocation15_spill] sm:$0xff] %v1607_v15  ;;  %v310_v25 = vadd.f32 %v309_v61, %v1588_v60  ;;  %v1617_v28 = vld [vmem:[%s1434_s17 + $0x170] sm:$0xff]  ;;  %v319_v30 = vadd.f32 %v1612_v21, %v1599_v3  ;;  %v1622_v34 = vld [vmem:[%s1434_s17 + $0x1a0] sm:$0xff]  ;;  %v1625_v35 = vld [vmem:[%s1434_s17 + $0x1a8] sm:$0xff] }
  0x69   : > { %292 = vadd.xlane.f32.xlu0 %v291_v54  ;;  %2499 = vst [vmem:[#allocation16_spill] sm:$0xff] %v1617_v28  ;;  %v1628_v36 = vld [vmem:[%s1434_s17 + $0x150] sm:$0xff]  ;;  %v1631_v40 = vld [vmem:[%s1434_s17 + $0x180] sm:$0xff]  ;;  %v1634_v42 = vld [vmem:[%s1434_s17 + $0x188] sm:$0xff]  ;;  %v316_v45 = vadd.f32 %v315_v14, %v1603_v10  ;;  %v325_v49 = vadd.f32 %v324_v19, %v1617_v28  ;;  %v334_v54 = vadd.f32 %v1625_v35, %v1622_v34 }
  0x6a   : > { %2500 = vst [vmem:[#allocation17_spill] sm:$0xff] %v1628_v36  ;;  %v1638_v47 = vld [vmem:[%s1434_s17 + $0x178] sm:$0xff]  ;;  %v311_v55 = vadd.f32 %v310_v25, %v1607_v15  ;;  %v320_v57 = vadd.f32 %v319_v30, %v1628_v36  ;;  %v1649_v61 = vld [vmem:[%s1434_s17 + $0x1b0] sm:$0xff]  ;;  %v1654_v14 = vld [vmem:[%s1434_s17 + $0x1e0] sm:$0xff] }
  0x6b   : > { %2501 = vst [vmem:[#allocation18_spill] sm:$0xff] %v1638_v47  ;;  %v1642_v51 = vld [vmem:[%s1434_s17 + $0x158] sm:$0xff]  ;;  %2503 = vst [vmem:[#allocation20_spill] sm:$0xff] %v1649_v61  ;;  %v1657_v19 = vld [vmem:[%s1434_s17 + $0x1e8] sm:$0xff]  ;;  %v326_v25 = vadd.f32 %v325_v49, %v1638_v47  ;;  %v335_v30 = vadd.f32 %v334_v54, %v1649_v61 }
  0x6c   : > { %307 = vadd.xlane.f32.xlu1 %v306_v8  ;;  %2502 = vst [vmem:[#allocation19_spill] sm:$0xff] %v1642_v51  ;;  %v329_v8 = vadd.f32 %v1634_v42, %v1631_v40  ;;  %v1660_v28 = vld [vmem:[%s1434_s17 + $0x190] sm:$0xff]  ;;  %v1666_v10 = vld [vmem:[%s1434_s17 + $0x1c8] sm:$0xff]  ;;  %v344_v36 = vadd.f32 %v1657_v19, %v1654_v14  ;;  %v321_v56 = vadd.f32 %v320_v57, %v1642_v51  ;;  %v1674_v15 = vld [vmem:[%s1434_s17 + $0x1b8] sm:$0xff] }
  0x6d   : > { %302 = vadd.xlane.f32.xlu0 %v301_v24  ;;  %2504 = vst [vmem:[#allocation21_spill] sm:$0xff] %v1660_v28  ;;  %v1663_v24 = vld [vmem:[%s1434_s17 + $0x1c0] sm:$0xff]  ;;  %2505 = vst [vmem:[#allocation22_spill] sm:$0xff] %v1666_v10  ;;  %v1678_v50 = vld [vmem:[%s1434_s17 + $0x1f0] sm:$0xff]  ;;  %v336_v54 = vadd.f32 %v335_v30, %v1674_v15 }
  0x6e   : > { %v330_v60 = vadd.f32 %v329_v8, %v1660_v28  ;;  %2506 = vst [vmem:[#allocation23_spill] sm:$0xff] %v1678_v50  ;;  %v1683_v49 = vld [vmem:[%s1434_s17 + $0x198] sm:$0xff]  ;;  %v1686_v47 = vld [vmem:[%s1434_s17 + $0x1d0] sm:$0xff] }
  0x6f   : > { %v1692_v61 = vld [vmem:[%s1434_s17 + $0x1f8] sm:$0xff] }
  0x70   : > { %317 = vadd.xlane.f32.xlu1 %v316_v45  ;;  %v339_v45 = vadd.f32 %v1666_v10, %v1663_v24  ;;  %v331_v57 = vadd.f32 %v330_v60, %v1683_v49  ;;  %2507 = vst [vmem:[#allocation24_spill] sm:$0xff] %v1692_v61  ;;  %v1696_v28 = vld [vmem:[%s1434_s17 + $0x1d8] sm:$0xff] }
  0x71   : > { %312 = vadd.xlane.f32.xlu0 %v311_v55  ;;  %v345_v55 = vadd.f32 %v344_v36, %v1678_v50 }
  0x72   : > { %v340_v8 = vadd.f32 %v339_v45, %v1686_v47 }
  0x73   : > { %v346_v51 = vadd.f32 %v345_v55, %v1692_v61 }
  0x74   : > { %327 = vadd.xlane.f32.xlu1 %v326_v25  ;;  %v341_v10 = vadd.f32 %v340_v8, %v1696_v28 }
  0x75   : > { %322 = vadd.xlane.f32.xlu0 %v321_v56 }
  0x78   : > { %337 = vadd.xlane.f32.xlu1 %v336_v54 }
  0x79   : > { %332 = vadd.xlane.f32.xlu0 %v331_v57 }
  0x7c   : > { %347 = vadd.xlane.f32.xlu1 %v346_v51 }
  0x7d   : > { %342 = vadd.xlane.f32.xlu0 %v341_v10 }
  0xed   : > { %v283_v25 = vpop.xlane.xlu1 %282 }
  0xee   : > { %v352_v30 = vmul.f32 0.001953125, %v283_v25  ;;  %v273_v36 = vpop.xlane.xlu0 %272 }
  0xef   : > { %v350_v56 = vmul.f32 0.001953125, %v273_v36 }
  0xf0   : > { %v1701_v60 = vsub.f32 %v1445_v0, %v352_v30  ;;  %v1704_v50 = vsub.f32 %v1448_v1, %v352_v30  ;;  %v1707_v45 = vsub.f32 %v1451_v2, %v352_v30  ;;  %v1710_v54 = vsub.f32 %v1462_v6, %v352_v30 }
  0xf1   : > { %v1713_v55 = vsub.f32 %v1456_v4, %v350_v56  ;;  %v1716_v10 = vsub.f32 %v1459_v5, %v350_v56  ;;  %v288_v51 = vpop.xlane.xlu1 %287  ;;  %v1719_v57 = vsub.f32 %v1465_v7, %v350_v56  ;;  %v1722_v0 = vsub.f32 %v1474_v11, %v350_v56 }
  0xf2   : > { %2508 = vst [vmem:[#allocation25_spill] sm:$0xff] %v1701_v60  ;;  %2509 = vst [vmem:[#allocation26_spill] sm:$0xff] %v1704_v50  ;;  %v353_v1 = vmul.f32 0.001953125, %v288_v51  ;;  %v278_v8 = vpop.xlane.xlu0 %277  ;;  %v438_v2 = vmul.f32 %v1701_v60, %v1701_v60  ;;  %v439_v6 = vmul.f32 %v1704_v50, %v1704_v50  ;;  %v440_v4 = vmul.f32 %v1707_v45, %v1707_v45 }
  0xf3   : > { %2510 = vst [vmem:[#allocation27_spill] sm:$0xff] %v1707_v45  ;;  %2511 = vst [vmem:[#allocation28_spill] sm:$0xff] %v1710_v54  ;;  %v351_v5 = vmul.f32 0.001953125, %v278_v8  ;;  %v430_v25 = vmul.f32 %v1713_v55, %v1713_v55  ;;  %v431_v7 = vmul.f32 %v1716_v10, %v1716_v10  ;;  %v432_v11 = vmul.f32 %v1719_v57, %v1719_v57 }
  0xf4   : > { %2512 = vst [vmem:[#allocation29_spill] sm:$0xff] %v1713_v55  ;;  %2513 = vst [vmem:[#allocation30_spill] sm:$0xff] %v1716_v10  ;;  %v1737_v30 = vsub.f32 %v1470_v9, %v353_v1  ;;  %v1740_v36 = vsub.f32 %v1477_v12, %v353_v1  ;;  %v433_v56 = vmul.f32 %v1722_v0, %v1722_v0 }
  0xf5   : > { %2514 = vst [vmem:[#allocation31_spill] sm:$0xff] %v1719_v57  ;;  %2515 = vst [vmem:[#allocation32_spill] sm:$0xff] %v1722_v0  ;;  %v441_v51 = vmul.f32 %v1710_v54, %v1710_v54  ;;  %v1747_v8 = vsub.f32 %v1486_v16, %v351_v5  ;;  %v1750_v45 = vsub.f32 %v1489_v17, %v351_v5  ;;  %v298_v50 = vpop.xlane.xlu1 %297 }
  0xf6   : > { %v494_v60 = vadd.f32 %v431_v7, %v430_v25  ;;  %v504_v57 = vadd.f32 %v439_v6, %v438_v2  ;;  %v355_v9 = vmul.f32 0.001953125, %v298_v50  ;;  %v293_v10 = vpop.xlane.xlu0 %292  ;;  %v1753_v12 = vsub.f32 %v1492_v18, %v351_v5 }
  0xf7   : > { %v1756_v55 = vsub.f32 %v1509_v26, %v351_v5  ;;  %v1759_v0 = vsub.f32 %v1480_v13, %v353_v1  ;;  %v354_v54 = vmul.f32 0.001953125, %v293_v10  ;;  %v434_v17 = vmul.f32 %v1747_v8, %v1747_v8 }
  0xf8   : > { %v495_v16 = vadd.f32 %v494_v60, %v432_v11  ;;  %v505_v61 = vadd.f32 %v504_v57, %v440_v4  ;;  %v1764_v25 = vsub.f32 %v1501_v22, %v355_v9  ;;  %v1767_v50 = vsub.f32 %v1504_v23, %v355_v9 }
  0xf9   : > { %v435_v18 = vmul.f32 %v1750_v45, %v1750_v45  ;;  %v436_v26 = vmul.f32 %v1753_v12, %v1753_v12  ;;  %v1774_v13 = vsub.f32 %v1517_v29, %v354_v54  ;;  %v1777_v60 = vsub.f32 %v1524_v32, %v354_v54  ;;  %v308_v10 = vpop.xlane.xlu1 %307 }
  0xfa   : > { %v496_v57 = vadd.f32 %v495_v16, %v433_v56  ;;  %v506_v2 = vadd.f32 %v505_v61, %v441_v51  ;;  %v1779_v22 = vmul.f32 0.001953125, %v308_v10  ;;  %v303_v6 = vpop.xlane.xlu0 %302  ;;  %v437_v23 = vmul.f32 %v1756_v55, %v1756_v55 }
  0xfb   : > { %v499_v4 = vadd.f32 %v435_v18, %v434_v17  ;;  %v1784_v5 = vsub.f32 %v1496_v20, %v353_v1  ;;  %v356_v7 = vmul.f32 0.001953125, %v303_v6  ;;  %v442_v29 = vmul.f32 %v1737_v30, %v1737_v30 }
  0xfc   : > { %497 = vadd.xlane.f32.xlu0 %v496_v57  ;;  %v443_v32 = vmul.f32 %v1740_v36, %v1740_v36  ;;  %v444_v61 = vmul.f32 %v1759_v0, %v1759_v0  ;;  %v1794_v11 = vsub.f32 %v1534_v37, %v1779_v22  ;;  %v1798_v56 = vsub.f32 %v1537_v38, %v1779_v22 }
  0xfd   : > { %v500_v20 = vadd.f32 %v499_v4, %v436_v26  ;;  %v445_v1 = vmul.f32 %v1784_v5, %v1784_v5  ;;  %v1803_v51 = vsub.f32 %v1549_v43, %v356_v7  ;;  %v1806_v16 = vsub.f32 %v1552_v44, %v356_v7  ;;  %v318_v17 = vpop.xlane.xlu1 %317 }
  0xfe   : > { %2516 = vst [vmem:[#allocation33_spill] sm:$0xff] %v1794_v11  ;;  %v509_v18 = vadd.f32 %v443_v32, %v442_v29  ;;  %v1809_v10 = vsub.f32 %v1527_v33, %v354_v54  ;;  %v1811_v37 = vmul.f32 0.001953125, %v318_v17  ;;  %v313_v57 = vpop.xlane.xlu0 %312  ;;  %v1814_v26 = vsub.f32 %v1544_v41, %v354_v54 }
  0xff   : > { %v501_v38 = vadd.f32 %v500_v20, %v437_v23  ;;  %v446_v6 = vmul.f32 %v1774_v13, %v1774_v13  ;;  %v358_v43 = vmul.f32 0.001953125, %v313_v57  ;;  %v447_v44 = vmul.f32 %v1777_v60, %v1777_v60 }
 0x100   : > { %507 = vadd.xlane.f32.xlu0 %v506_v2  ;;  %v510_v4 = vadd.f32 %v509_v18, %v444_v61  ;;  %v448_v33 = vmul.f32 %v1809_v10, %v1809_v10  ;;  %v1824_v29 = vsub.f32 %v1561_v48, %v1811_v37  ;;  %v1828_v41 = vsub.f32 %v1572_v53, %v1811_v37 }
 0x101   : > { %502 = vadd.xlane.f32.xlu1 %v501_v38  ;;  %v449_v54 = vmul.f32 %v1814_v26, %v1814_v26  ;;  %v1833_v2 = vsub.f32 %v1512_v27, %v355_v9  ;;  %v1836_v23 = vsub.f32 %v1582_v58, %v358_v43  ;;  %v1839_v32 = vsub.f32 %v1585_v59, %v358_v43  ;;  %v328_v61 = vpop.xlane.xlu1 %327 }
 0x102   : > { %2517 = vst [vmem:[#allocation34_spill] sm:$0xff] %v1828_v41  ;;  %v511_v48 = vadd.f32 %v510_v4, %v445_v1  ;;  %v514_v20 = vadd.f32 %v447_v44, %v446_v6  ;;  %v1841_v17 = vmul.f32 0.001953125, %v328_v61  ;;  %v323_v53 = vpop.xlane.xlu0 %322  ;;  %v1844_v18 = vsub.f32 %v1521_v31, %v355_v9 }
 0x103   : > { %2518 = vst [vmem:[#allocation35_spill] sm:$0xff] %v1839_v32  ;;  %v450_v57 = vmul.f32 %v1764_v25, %v1764_v25  ;;  %v451_v27 = vmul.f32 %v1767_v50, %v1767_v50  ;;  %v1850_v58 = vmul.f32 0.001953125, %v323_v53  ;;  %v452_v59 = vmul.f32 %v1833_v2, %v1833_v2 }
 0x104   : > { %v515_v38 = vadd.f32 %v514_v20, %v448_v33  ;;  %v1855_v1 = vsub.f32 %v1556_v46, %v356_v7  ;;  %v1859_v6 = vsub.f32 %v1593_v62, %v1841_v17  ;;  %v1863_v31 = vsub.f32 %v1596_v63, %v1841_v17 }
 0x105   : > { %512 = vadd.xlane.f32.xlu1 %v511_v48  ;;  %v453_v9 = vmul.f32 %v1844_v18, %v1844_v18  ;;  %v519_v4 = vadd.f32 %v451_v27, %v450_v57  ;;  %v1869_v44 = vsub.f32 %v1599_v3, %v1850_v58  ;;  %v1873_v46 = vsub.f32 %v1612_v21, %v1850_v58  ;;  %v338_v62 = vpop.xlane.xlu1 %337 }
 0x106   : > { %v516_v33 = vadd.f32 %v515_v38, %v449_v54  ;;  %v1876_v61 = vsub.f32 %v1569_v52, %v356_v7  ;;  %v1878_v63 = vmul.f32 0.001953125, %v338_v62  ;;  %v333_v48 = vpop.xlane.xlu0 %332  ;;  %v454_v53 = vmul.f32 %v1803_v51, %v1803_v51  ;;  %v2522_v62 = vld [vmem:[#allocation11_spill] sm:$0xff] }
 0x107   : > { %2519 = vst [vmem:[#allocation36_spill] sm:$0xff] %v1869_v44  ;;  %2520 = vst [vmem:[#allocation37_spill] sm:$0xff] %v1873_v46  ;;  %v520_v20 = vadd.f32 %v519_v4, %v452_v59  ;;  %v455_v3 = vmul.f32 %v1806_v16, %v1806_v16  ;;  %v1884_v57 = vmul.f32 0.001953125, %v333_v48  ;;  %v456_v21 = vmul.f32 %v1855_v1, %v1855_v1 }
 0x108   : > { %517 = vadd.xlane.f32.xlu0 %v516_v33  ;;  %v457_v52 = vmul.f32 %v1876_v61, %v1876_v61  ;;  %v1892_v7 = vsub.f32 %v1540_v39, %v1779_v22  ;;  %v1896_v54 = vsub.f32 %v1622_v34, %v1878_v63  ;;  %v1900_v27 = vsub.f32 %v1625_v35, %v1878_v63 }
 0x109   : > { %v521_v38 = vadd.f32 %v520_v20, %v453_v9  ;;  %v524_v59 = vadd.f32 %v455_v3, %v454_v53  ;;  %v1904_v4 = vsub.f32 %v1631_v40, %v1884_v57  ;;  %v1908_v33 = vsub.f32 %v1634_v42, %v1884_v57  ;;  %v348_v39 = vpop.xlane.xlu1 %347  ;;  %v2524_v3 = vld [vmem:[#allocation13_spill] sm:$0xff] }
 0x10a   : > { %2521 = vst [vmem:[#allocation38_spill] sm:$0xff] %v1892_v7  ;;  %v1912_v48 = vsub.f32 %v2522_v62, %v1779_v22  ;;  %v458_v34 = vmul.f32 %v1794_v11, %v1794_v11  ;;  %v1916_v9 = vmul.f32 0.001953125, %v348_v39  ;;  %v343_v20 = vpop.xlane.xlu0 %342  ;;  %v459_v40 = vmul.f32 %v1798_v56, %v1798_v56  ;;  %v2526_v11 = vld [vmem:[#allocation15_spill] sm:$0xff] }
 0x10b   : > { %522 = vadd.xlane.f32.xlu1 %v521_v38  ;;  %v525_v35 = vadd.f32 %v524_v59, %v456_v21  ;;  %v460_v42 = vmul.f32 %v1892_v7, %v1892_v7  ;;  %v1922_v53 = vmul.f32 0.001953125, %v343_v20  ;;  %v1927_v62 = vsub.f32 %v2524_v3, %v358_v43  ;;  %v2531_v3 = vld [vmem:[#allocation22_spill] sm:$0xff] }
 0x10c   : > { %2523 = vst [vmem:[#allocation11_spill] sm:$0xff] %v1912_v48  ;;  %v461_v22 = vmul.f32 %v1912_v48, %v1912_v48  ;;  %v1930_v38 = vsub.f32 %v2526_v11, %v358_v43  ;;  %v1934_v59 = vsub.f32 %v1654_v14, %v1916_v9  ;;  %v1938_v39 = vsub.f32 %v1657_v19, %v1916_v9 }
 0x10d   : > { %2525 = vst [vmem:[#allocation13_spill] sm:$0xff] %v1927_v62  ;;  %v526_v21 = vadd.f32 %v525_v35, %v457_v52  ;;  %v529_v20 = vadd.f32 %v459_v40, %v458_v34  ;;  %v1942_v7 = vsub.f32 %v1663_v24, %v1922_v53  ;;  %v1946_v48 = vsub.f32 %v2531_v3, %v1922_v53  ;;  %v2533_v24 = vld [vmem:[#allocation12_spill] sm:$0xff]  ;;  %v2534_v40 = vld [vmem:[#allocation14_spill] sm:$0xff] }
 0x10e   : > { %2527 = vst [vmem:[#allocation15_spill] sm:$0xff] %v1930_v38  ;;  %2528 = vst [vmem:[#allocation39_spill] sm:$0xff] %v1934_v59  ;;  %v462_v11 = vmul.f32 %v1836_v23, %v1836_v23  ;;  %v463_v14 = vmul.f32 %v1839_v32, %v1839_v32  ;;  %v464_v19 = vmul.f32 %v1927_v62, %v1927_v62 }
 0x10f   : > { %2529 = vst [vmem:[#allocation40_spill] sm:$0xff] %v1938_v39  ;;  %2530 = vst [vmem:[#allocation41_spill] sm:$0xff] %v1942_v7  ;;  %527 = vadd.xlane.f32.xlu0 %v526_v21  ;;  %v530_v43 = vadd.f32 %v529_v20, %v460_v42  ;;  %v465_v52 = vmul.f32 %v1930_v38, %v1930_v38  ;;  %v1958_v34 = vsub.f32 %v2533_v24, %v1811_v37  ;;  %v2535_v38 = vld [vmem:[#allocation17_spill] sm:$0xff] }
 0x110   : > { %2532 = vst [vmem:[#allocation22_spill] sm:$0xff] %v1946_v48  ;;  %v534_v35 = vadd.f32 %v463_v14, %v462_v11  ;;  %v1962_v3 = vsub.f32 %v2534_v40, %v1811_v37  ;;  %v466_v32 = vmul.f32 %v1824_v29, %v1824_v29  ;;  %v467_v42 = vmul.f32 %v1828_v41, %v1828_v41  ;;  %v2537_v11 = vld [vmem:[#allocation19_spill] sm:$0xff] }
 0x111   : > { %v531_v21 = vadd.f32 %v530_v43, %v461_v22  ;;  %v468_v20 = vmul.f32 %v1958_v34, %v1958_v34  ;;  %v1972_v62 = vsub.f32 %v2535_v38, %v1850_v58  ;;  %v1976_v14 = vsub.f32 %v2537_v11, %v1850_v58  ;;  %v2539_v58 = vld [vmem:[#allocation16_spill] sm:$0xff] }
 0x112   : > { %v535_v37 = vadd.f32 %v534_v35, %v464_v19  ;;  %v469_v24 = vmul.f32 %v1962_v3, %v1962_v3  ;;  %v539_v40 = vadd.f32 %v467_v42, %v466_v32  ;;  %v470_v41 = vmul.f32 %v1869_v44, %v1869_v44  ;;  %v2540_v32 = vld [vmem:[#allocation18_spill] sm:$0xff]  ;;  %v2541_v44 = vld [vmem:[#allocation21_spill] sm:$0xff] }
 0x113   : > { %2536 = vst [vmem:[#allocation12_spill] sm:$0xff] %v1972_v62  ;;  %2538 = vst [vmem:[#allocation14_spill] sm:$0xff] %v1976_v14  ;;  %532 = vadd.xlane.f32.xlu1 %v531_v21  ;;  %v471_v22 = vmul.f32 %v1873_v46, %v1873_v46  ;;  %v472_v38 = vmul.f32 %v1972_v62, %v1972_v62  ;;  %v473_v43 = vmul.f32 %v1976_v14, %v1976_v14 }
 0x114   : > { %v1990_v19 = vsub.f32 %v2539_v58, %v1841_v17  ;;  %v536_v35 = vadd.f32 %v535_v37, %v465_v52  ;;  %v540_v11 = vadd.f32 %v539_v40, %v468_v20  ;;  %v1994_v42 = vsub.f32 %v2540_v32, %v1841_v17 }
 0x115   : > { %v474_v21 = vmul.f32 %v1859_v6, %v1859_v6  ;;  %v544_v46 = vadd.f32 %v471_v22, %v470_v41  ;;  %v475_v62 = vmul.f32 %v1863_v31, %v1863_v31  ;;  %v2004_v58 = vsub.f32 %v2541_v44, %v1884_v57 }
 0x116   : > { %v476_v14 = vmul.f32 %v1990_v19, %v1990_v19  ;;  %537 = vadd.xlane.f32.xlu0 %v536_v35  ;;  %v541_v52 = vadd.f32 %v540_v11, %v469_v24  ;;  %v477_v17 = vmul.f32 %v1994_v42, %v1994_v42  ;;  %v2010_v20 = vsub.f32 %v1683_v49, %v1884_v57  ;;  %v2542_v35 = vld [vmem:[#allocation20_spill] sm:$0xff] }
 0x117   : > { %v478_v41 = vmul.f32 %v1904_v4, %v1904_v4  ;;  %v545_v37 = vadd.f32 %v544_v46, %v472_v38  ;;  %v549_v40 = vadd.f32 %v475_v62, %v474_v21  ;;  %v479_v22 = vmul.f32 %v1908_v33, %v1908_v33 }
 0x118   : > { %v480_v44 = vmul.f32 %v2004_v58, %v2004_v58  ;;  %542 = vadd.xlane.f32.xlu1 %v541_v52  ;;  %v481_v24 = vmul.f32 %v2010_v20, %v2010_v20  ;;  %v2022_v11 = vsub.f32 %v2542_v35, %v1878_v63  ;;  %v2026_v49 = vsub.f32 %v1674_v15, %v1878_v63 }
 0x119   : > { %v482_v46 = vmul.f32 %v1896_v54, %v1896_v54  ;;  %v546_v57 = vadd.f32 %v545_v37, %v473_v43  ;;  %v550_v62 = vadd.f32 %v549_v40, %v476_v14  ;;  %v554_v38 = vadd.f32 %v479_v22, %v478_v41 }
 0x11a   : > { %v483_v32 = vmul.f32 %v1900_v27, %v1900_v27  ;;  %v484_v21 = vmul.f32 %v2022_v11, %v2022_v11  ;;  %v485_v52 = vmul.f32 %v2026_v49, %v2026_v49  ;;  %v2038_v35 = vsub.f32 %v1686_v47, %v1922_v53  ;;  %v2545_v47 = vld [vmem:[#allocation23_spill] sm:$0xff] }
 0x11b   : > { %v2042_v15 = vsub.f32 %v1696_v28, %v1922_v53  ;;  %547 = vadd.xlane.f32.xlu0 %v546_v57  ;;  %v551_v63 = vadd.f32 %v550_v62, %v477_v17  ;;  %v555_v14 = vadd.f32 %v554_v38, %v480_v44  ;;  %v486_v41 = vmul.f32 %v1942_v7, %v1942_v7  ;;  %v2547_v17 = vld [vmem:[#allocation24_spill] sm:$0xff] }
 0x11c   : > { %2543 = vst [vmem:[#allocation17_spill] sm:$0xff] %v2038_v35  ;;  %v559_v43 = vadd.f32 %v483_v32, %v482_v46  ;;  %v487_v37 = vmul.f32 %v1946_v48, %v1946_v48  ;;  %v488_v40 = vmul.f32 %v2038_v35, %v2038_v35  ;;  %v2052_v22 = vsub.f32 %v2545_v47, %v1916_v9 }
 0x11d   : > { %2544 = vst [vmem:[#allocation19_spill] sm:$0xff] %v2042_v15  ;;  %552 = vadd.xlane.f32.xlu1 %v551_v63  ;;  %v556_v28 = vadd.f32 %v555_v14, %v481_v24  ;;  %v2056_v44 = vsub.f32 %v2547_v17, %v1916_v9  ;;  %v490_v46 = vmul.f32 %v1934_v59, %v1934_v59 }
 0x11e   : > { %2546 = vst [vmem:[#allocation16_spill] sm:$0xff] %v2052_v22  ;;  %v560_v53 = vadd.f32 %v559_v43, %v484_v21  ;;  %v489_v57 = vmul.f32 %v2042_v15, %v2042_v15  ;;  %v564_v62 = vadd.f32 %v487_v37, %v486_v41  ;;  %v491_v38 = vmul.f32 %v1938_v39, %v1938_v39 }
 0x11f   : > { %2548 = vst [vmem:[#allocation18_spill] sm:$0xff] %v2056_v44  ;;  %v492_v32 = vmul.f32 %v2052_v22, %v2052_v22  ;;  %557 = vadd.xlane.f32.xlu0 %v556_v28  ;;  %v493_v9 = vmul.f32 %v2056_v44, %v2056_v44  ;;  %v688_v37 = vlaneseq  ;;  %v2551_v22 = vld [vmem:[#allocation31_spill] sm:$0xff] }
 0x120   : > { %v561_v24 = vadd.f32 %v560_v53, %v485_v52  ;;  %v565_v21 = vadd.f32 %v564_v62, %v488_v40  ;;  %v569_v63 = vadd.f32 %v491_v38, %v490_v46  ;;  %v622_v38 = vld [vmem:[#allocation5] sm:$0xf] }
 0x121   : > { %v689_v15 = vshrl.u32 %v688_v37, 7 }
 0x122   : > { %562 = vadd.xlane.f32.xlu1 %v561_v24  ;;  %v566_v14 = vadd.f32 %v565_v21, %v489_v57  ;;  %v570_v43 = vadd.f32 %v569_v63, %v492_v32 }
 0x123   : > { %v690_v44 = vsub.s32 0, %v689_v15  ;;  %v694_v46 = vsub.s32 1, %v689_v15  ;;  %v698_v32 = vsub.s32 2, %v689_v15  ;;  %v702_v24 = vsub.s32 3, %v689_v15 }
 0x124   : > { %567 = vadd.xlane.f32.xlu0 %v566_v14  ;;  %v571_v47 = vadd.f32 %v570_v43, %v493_v9  ;;  %v772_v9 = vld [vmem:[%s2433_s2] sm:$0xf] }
 0x125   : > { %v2071_v14 = vrot.slane %v622_v38, %v690_v44  ;;  %v2079_v37 = vrot.slane %v772_v9, %v690_v44 }
 0x126   : > { %572 = vadd.xlane.f32.xlu1 %v571_v47  ;;  %v2075_v47 = vrot.slane %v622_v38, %v698_v32 }
 0x189   : > { %v498_v41 = vpop.xlane.xlu0 %497 }
 0x18a   : > { %v574_v17 = vmul.f32 0.001953125, %v498_v41  ;;  %v2077_v41 = vrot.slane %v622_v38, %v702_v24 }
 0x18c   : > { %v590_v39 = vadd.f32 1e-12, %v574_v17  ;;  %v2081_v17 = vrot.slane %v772_v9, %v694_v46 }
 0x18d   : > { %v508_v59 = vpop.xlane.xlu0 %507 }
 0x18e   : > { %1103 = vrsqrt.f32 %v590_v39  ;;  %v503_v28 = vpop.xlane.xlu1 %502  ;;  %v576_v52 = vmul.f32 0.001953125, %v508_v59  ;;  %v2073_v59 = vrot.slane %v622_v38, %v694_v46  ;;  %v2552_v38 = vld [vmem:[#allocation32_spill] sm:$0xff] }
 0x18f   : > { %v575_v40 = vmul.f32 0.001953125, %v503_v28  ;;  %v2083_v28 = vrot.slane %v772_v9, %v698_v32 }
 0x190   : > { %v592_v53 = vadd.f32 1e-12, %v576_v52  ;;  %v2085_v52 = vrot.slane %v772_v9, %v702_v24 }
 0x191   : > { %v591_v62 = vadd.f32 1e-12, %v575_v40 }
 0x192   : > { %1105 = vrsqrt.f32 %v592_v53  ;;  %v513_v57 = vpop.xlane.xlu1 %512 }
 0x193   : > { %1107 = vrsqrt.f32 %v591_v62  ;;  %v577_v21 = vmul.f32 0.001953125, %v513_v57  ;;  %v2549_v62 = vld [vmem:[#allocation29_spill] sm:$0xff] }
 0x195   : > { %v593_v63 = vadd.f32 1e-12, %v577_v21  ;;  %v518_v39 = vpop.xlane.xlu0 %517  ;;  %v2550_v21 = vld [vmem:[#allocation30_spill] sm:$0xff] }
 0x196   : > { %v578_v43 = vmul.f32 0.001953125, %v518_v39 }
 0x197   : > { %1109 = vrsqrt.f32 %v593_v63 }
 0x198   : > { %v1104_v15 = vpop.eup %1103  ;;  %v594_v40 = vadd.f32 1e-12, %v578_v43  ;;  %v523_v53 = vpop.xlane.xlu1 %522 }
 0x199   : > { %v623_v57 = vmul.f32 %v1104_v15, %v2549_v62  ;;  %v624_v39 = vmul.f32 %v1104_v15, %v2550_v21  ;;  %v625_v35 = vmul.f32 %v1104_v15, %v2551_v22  ;;  %v626_v48 = vmul.f32 %v1104_v15, %v2552_v38  ;;  %v2553_v38 = vld [vmem:[#allocation25_spill] sm:$0xff] }
 0x19a   : > { %1111 = vrsqrt.f32 %v594_v40  ;;  %v579_v44 = vmul.f32 0.001953125, %v523_v53 }
 0x19b   : > { %v708_v63 = vmul.f32 %v2071_v14, %v623_v57  ;;  %v709_v46 = vmul.f32 %v2073_v59, %v624_v39  ;;  %v710_v32 = vmul.f32 %v2075_v47, %v625_v35  ;;  %v711_v24 = vmul.f32 %v2077_v41, %v626_v48 }
 0x19c   : > { %v1106_v9 = vpop.eup %1105  ;;  %v2095_v43 = vadd.f32 1e-12, %v579_v44  ;;  %v2101_v53 = vpop.xlane.xlu0 %527 }
 0x19d   : > { %v1108_v62 = vpop.eup %1107  ;;  %v794_v21 = vadd.f32 %v2079_v37, %v708_v63  ;;  %v795_v22 = vadd.f32 %v2081_v17, %v709_v46  ;;  %v796_v15 = vadd.f32 %v2083_v28, %v710_v32  ;;  %v797_v40 = vadd.f32 %v2085_v52, %v711_v24 }
 0x19e   : > { %v627_v57 = vmul.f32 %v1108_v62, %v1747_v8  ;;  %v628_v35 = vmul.f32 %v1108_v62, %v1750_v45  ;;  %v629_v48 = vmul.f32 %v1108_v62, %v1753_v12  ;;  %v630_v39 = vmul.f32 %v1108_v62, %v1756_v55  ;;  %v2554_v8 = vld [vmem:[#allocation26_spill] sm:$0xff]  ;;  %v2555_v45 = vld [vmem:[#allocation27_spill] sm:$0xff]  ;;  %v2556_v12 = vld [vmem:[#allocation28_spill] sm:$0xff] }
 0x19f   : > { %858 = vst [vmem:[%s2109_s4] sm:$0xff] %v794_v21  ;;  %859 = vst [vmem:[%s2109_s4 + $0x8] sm:$0xff] %v795_v22  ;;  %v631_v44 = vmul.f32 %v1106_v9, %v2553_v38  ;;  %v632_v63 = vmul.f32 %v1106_v9, %v2554_v8  ;;  %v633_v46 = vmul.f32 %v1106_v9, %v2555_v45  ;;  %1113 = vrsqrt.f32 %v2095_v43 }
 0x1a0   : > { %860 = vst [vmem:[%s2109_s4 + $0x10] sm:$0xff] %v796_v15  ;;  %861 = vst [vmem:[%s2109_s4 + $0x18] sm:$0xff] %v797_v40  ;;  %v634_v32 = vmul.f32 %v1106_v9, %v2556_v12  ;;  %v712_v55 = vmul.f32 %v2071_v14, %v627_v57  ;;  %v713_v24 = vmul.f32 %v2073_v59, %v628_v35  ;;  %v533_v21 = vpop.xlane.xlu1 %532 }
 0x1a1   : > { %v714_v62 = vmul.f32 %v2075_v47, %v629_v48  ;;  %v715_v7 = vmul.f32 %v2077_v41, %v630_v39  ;;  %v1110_v22 = vpop.eup %1109  ;;  %v716_v15 = vmul.f32 %v2071_v14, %v631_v44  ;;  %v717_v40 = vmul.f32 %v2073_v59, %v632_v63 }
 0x1a2   : > { %v718_v9 = vmul.f32 %v2075_v47, %v633_v46  ;;  %v719_v57 = vmul.f32 %v2077_v41, %v634_v32  ;;  %v798_v35 = vadd.f32 %v2079_v37, %v712_v55  ;;  %v799_v48 = vadd.f32 %v2081_v17, %v713_v24 }
 0x1a3   : > { %v800_v39 = vadd.f32 %v2083_v28, %v714_v62  ;;  %v801_v38 = vadd.f32 %v2085_v52, %v715_v7  ;;  %v802_v44 = vadd.f32 %v2079_v37, %v716_v15  ;;  %v803_v8 = vadd.f32 %v2081_v17, %v717_v40  ;;  %v538_v46 = vpop.xlane.xlu0 %537 }
 0x1a4   : > { %v804_v63 = vadd.f32 %v2083_v28, %v718_v9  ;;  %v805_v45 = vadd.f32 %v2085_v52, %v719_v57  ;;  %v1112_v12 = vpop.eup %1111  ;;  %862 = vst [vmem:[%s2109_s4 + $0x20] sm:$0xff] %v798_v35  ;;  %863 = vst [vmem:[%s2109_s4 + $0x28] sm:$0xff] %v799_v48  ;;  %v635_v32 = vmul.f32 %v1110_v22, %v1737_v30 }
 0x1a5   : > { %864 = vst [vmem:[%s2109_s4 + $0x30] sm:$0xff] %v800_v39  ;;  %865 = vst [vmem:[%s2109_s4 + $0x38] sm:$0xff] %v801_v38  ;;  %v636_v7 = vmul.f32 %v1110_v22, %v1740_v36  ;;  %v637_v55 = vmul.f32 %v1110_v22, %v1759_v0  ;;  %v638_v24 = vmul.f32 %v1110_v22, %v1784_v5  ;;  %v543_v57 = vpop.xlane.xlu1 %542 }
 0x1a6   : > { %866 = vst [vmem:[%s2109_s4 + $0x40] sm:$0xff] %v802_v44  ;;  %867 = vst [vmem:[%s2109_s4 + $0x48] sm:$0xff] %v803_v8  ;;  %v639_v62 = vmul.f32 %v1112_v12, %v1774_v13  ;;  %v640_v15 = vmul.f32 %v1112_v12, %v1777_v60  ;;  %v641_v40 = vmul.f32 %v1112_v12, %v1809_v10 }
 0x1a7   : > { %868 = vst [vmem:[%s2109_s4 + $0x50] sm:$0xff] %v804_v63  ;;  %869 = vst [vmem:[%s2109_s4 + $0x58] sm:$0xff] %v805_v45  ;;  %v642_v9 = vmul.f32 %v1112_v12, %v1814_v26  ;;  %v720_v30 = vmul.f32 %v2071_v14, %v635_v32  ;;  %v721_v36 = vmul.f32 %v2073_v59, %v636_v7  ;;  %v580_v12 = vmul.f32 0.001953125, %v2101_v53 }
 0x1a8   : > { %v722_v0 = vmul.f32 %v2075_v47, %v637_v55  ;;  %v723_v5 = vmul.f32 %v2077_v41, %v638_v24  ;;  %v724_v13 = vmul.f32 %v2071_v14, %v639_v62  ;;  %v725_v60 = vmul.f32 %v2073_v59, %v640_v15  ;;  %v548_v38 = vpop.xlane.xlu0 %547 }
 0x1a9   : > { %v726_v10 = vmul.f32 %v2075_v47, %v641_v40  ;;  %v727_v26 = vmul.f32 %v2077_v41, %v642_v9  ;;  %v806_v22 = vadd.f32 %v2079_v37, %v720_v30  ;;  %v807_v35 = vadd.f32 %v2081_v17, %v721_v36 }
 0x1aa   : > { %v808_v48 = vadd.f32 %v2083_v28, %v722_v0  ;;  %v809_v39 = vadd.f32 %v2085_v52, %v723_v5  ;;  %v810_v44 = vadd.f32 %v2079_v37, %v724_v13  ;;  %v811_v8 = vadd.f32 %v2081_v17, %v725_v60  ;;  %v553_v55 = vpop.xlane.xlu1 %552 }
 0x1ab   : > { %v812_v63 = vadd.f32 %v2083_v28, %v726_v10  ;;  %v813_v45 = vadd.f32 %v2085_v52, %v727_v26  ;;  %870 = vst [vmem:[%s2109_s4 + $0x60] sm:$0xff] %v806_v22  ;;  %871 = vst [vmem:[%s2109_s4 + $0x68] sm:$0xff] %v807_v35  ;;  %v581_v32 = vmul.f32 0.001953125, %v533_v21  ;;  %v582_v7 = vmul.f32 0.001953125, %v538_v46  ;;  %v1114_v22 = vpop.eup %1113 }
 0x1ac   : > { %872 = vst [vmem:[%s2109_s4 + $0x70] sm:$0xff] %v808_v48  ;;  %873 = vst [vmem:[%s2109_s4 + $0x78] sm:$0xff] %v809_v39  ;;  %v583_v24 = vmul.f32 0.001953125, %v543_v57  ;;  %v584_v62 = vmul.f32 0.001953125, %v548_v38  ;;  %v585_v15 = vmul.f32 0.001953125, %v553_v55  ;;  %v558_v36 = vpop.xlane.xlu0 %557  ;;  %v643_v39 = vmul.f32 %v1114_v22, %v1764_v25 }
 0x1ad   : > { %874 = vst [vmem:[%s2109_s4 + $0x80] sm:$0xff] %v810_v44  ;;  %875 = vst [vmem:[%s2109_s4 + $0x88] sm:$0xff] %v811_v8  ;;  %v596_v40 = vadd.f32 1e-12, %v580_v12  ;;  %v597_v9 = vadd.f32 1e-12, %v581_v32  ;;  %v644_v38 = vmul.f32 %v1114_v22, %v1767_v50  ;;  %v645_v44 = vmul.f32 %v1114_v22, %v1833_v2 }
 0x1ae   : > { %876 = vst [vmem:[%s2109_s4 + $0x90] sm:$0xff] %v812_v63  ;;  %877 = vst [vmem:[%s2109_s4 + $0x98] sm:$0xff] %v813_v45  ;;  %v598_v30 = vadd.f32 1e-12, %v582_v7  ;;  %v599_v0 = vadd.f32 1e-12, %v583_v24  ;;  %v646_v8 = vmul.f32 %v1114_v22, %v1844_v18  ;;  %v728_v63 = vmul.f32 %v2071_v14, %v643_v39 }
 0x1af   : > { %1115 = vrsqrt.f32 %v596_v40  ;;  %v600_v5 = vadd.f32 1e-12, %v584_v62  ;;  %v586_v43 = vmul.f32 0.001953125, %v558_v36  ;;  %v563_v13 = vpop.xlane.xlu1 %562  ;;  %v601_v53 = vadd.f32 1e-12, %v585_v15 }
 0x1b0   : > { %1117 = vrsqrt.f32 %v597_v9  ;;  %v587_v21 = vmul.f32 0.001953125, %v563_v13  ;;  %v729_v45 = vmul.f32 %v2073_v59, %v644_v38  ;;  %v730_v12 = vmul.f32 %v2075_v47, %v645_v44  ;;  %v2558_v13 = vld [vmem:[#allocation38_spill] sm:$0xff] }
 0x1b1   : > { %1119 = vrsqrt.f32 %v598_v30  ;;  %v602_v46 = vadd.f32 1e-12, %v586_v43  ;;  %v568_v60 = vpop.xlane.xlu0 %567  ;;  %v731_v32 = vmul.f32 %v2077_v41, %v646_v8  ;;  %v814_v2 = vadd.f32 %v2079_v37, %v728_v63 }
 0x1b2   : > { %1121 = vrsqrt.f32 %v599_v0  ;;  %v603_v57 = vadd.f32 1e-12, %v587_v21  ;;  %v588_v10 = vmul.f32 0.001953125, %v568_v60  ;;  %v815_v18 = vadd.f32 %v2081_v17, %v729_v45  ;;  %v2557_v0 = vld [vmem:[#allocation33_spill] sm:$0xff]  ;;  %v2559_v21 = vld [vmem:[#allocation11_spill] sm:$0xff] }
 0x1b3   : > { %1123 = vrsqrt.f32 %v600_v5  ;;  %v573_v26 = vpop.xlane.xlu1 %572  ;;  %v816_v55 = vadd.f32 %v2083_v28, %v730_v12  ;;  %v817_v24 = vadd.f32 %v2085_v52, %v731_v32  ;;  %878 = vst [vmem:[%s2109_s4 + $0xa0] sm:$0xff] %v814_v2 }
 0x1b4   : > { %1125 = vrsqrt.f32 %v601_v53  ;;  %v604_v35 = vadd.f32 1e-12, %v588_v10  ;;  %v589_v48 = vmul.f32 0.001953125, %v573_v26  ;;  %879 = vst [vmem:[%s2109_s4 + $0xa8] sm:$0xff] %v815_v18  ;;  %v2561_v18 = vld [vmem:[#allocation13_spill] sm:$0xff] }
 0x1b5   : > { %1127 = vrsqrt.f32 %v602_v46  ;;  %880 = vst [vmem:[%s2109_s4 + $0xb0] sm:$0xff] %v816_v55  ;;  %881 = vst [vmem:[%s2109_s4 + $0xb8] sm:$0xff] %v817_v24  ;;  %v2562_v24 = vld [vmem:[#allocation15_spill] sm:$0xff] }
 0x1b6   : > { %1129 = vrsqrt.f32 %v603_v57  ;;  %v2185_v25 = vadd.f32 1e-12, %v589_v48 }
 0x1b7   : > { %1131 = vrsqrt.f32 %v604_v35 }
 0x1b8   : > { %1133 = vrsqrt.f32 %v2185_v25 }
 0x1b9   : > { %v1116_v7 = vpop.eup %1115 }
 0x1ba   : > { %v1118_v50 = vpop.eup %1117  ;;  %v647_v15 = vmul.f32 %v1116_v7, %v1803_v51  ;;  %v648_v40 = vmul.f32 %v1116_v7, %v1806_v16  ;;  %v649_v9 = vmul.f32 %v1116_v7, %v1855_v1  ;;  %v650_v30 = vmul.f32 %v1116_v7, %v1876_v61 }
 0x1bb   : > { %v1120_v62 = vpop.eup %1119  ;;  %v651_v5 = vmul.f32 %v1118_v50, %v2557_v0  ;;  %v652_v43 = vmul.f32 %v1118_v50, %v1798_v56  ;;  %v653_v53 = vmul.f32 %v1118_v50, %v2558_v13  ;;  %v654_v46 = vmul.f32 %v1118_v50, %v2559_v21  ;;  %v2560_v50 = vld [vmem:[#allocation35_spill] sm:$0xff] }
 0x1bc   : > { %v1122_v36 = vpop.eup %1121  ;;  %v732_v16 = vmul.f32 %v2071_v14, %v647_v15  ;;  %v733_v1 = vmul.f32 %v2073_v59, %v648_v40  ;;  %v734_v61 = vmul.f32 %v2075_v47, %v649_v9  ;;  %v735_v60 = vmul.f32 %v2077_v41, %v650_v30  ;;  %v2563_v9 = vld [vmem:[#allocation34_spill] sm:$0xff] }
 0x1bd   : > { %v1124_v51 = vpop.eup %1123  ;;  %v736_v10 = vmul.f32 %v2071_v14, %v651_v5  ;;  %v737_v56 = vmul.f32 %v2073_v59, %v652_v43  ;;  %v738_v26 = vmul.f32 %v2075_v47, %v653_v53  ;;  %v739_v22 = vmul.f32 %v2077_v41, %v654_v46 }
 0x1be   : > { %v2207_v57 = vpop.eup %1125  ;;  %v818_v48 = vadd.f32 %v2079_v37, %v732_v16  ;;  %v819_v39 = vadd.f32 %v2081_v17, %v733_v1  ;;  %v820_v38 = vadd.f32 %v2083_v28, %v734_v61  ;;  %v821_v44 = vadd.f32 %v2085_v52, %v735_v60 }
 0x1bf   : > { %v2213_v35 = vpop.eup %1127  ;;  %v822_v8 = vadd.f32 %v2079_v37, %v736_v10  ;;  %v823_v63 = vadd.f32 %v2081_v17, %v737_v56  ;;  %v824_v45 = vadd.f32 %v2083_v28, %v738_v26  ;;  %v825_v12 = vadd.f32 %v2085_v52, %v739_v22  ;;  %v2564_v26 = vld [vmem:[#allocation36_spill] sm:$0xff] }
 0x1c0   : > { %v2223_v32 = vpop.eup %1129  ;;  %882 = vst [vmem:[%s2109_s4 + $0xc0] sm:$0xff] %v818_v48  ;;  %883 = vst [vmem:[%s2109_s4 + $0xc8] sm:$0xff] %v819_v39  ;;  %v655_v7 = vmul.f32 %v1120_v62, %v1836_v23  ;;  %v656_v2 = vmul.f32 %v1120_v62, %v2560_v50  ;;  %v657_v55 = vmul.f32 %v1120_v62, %v2561_v18  ;;  %v2565_v48 = vld [vmem:[#allocation37_spill] sm:$0xff] }
 0x1c1   : > { %884 = vst [vmem:[%s2109_s4 + $0xd0] sm:$0xff] %v820_v38  ;;  %885 = vst [vmem:[%s2109_s4 + $0xd8] sm:$0xff] %v821_v44  ;;  %v658_v15 = vmul.f32 %v1120_v62, %v2562_v24  ;;  %v659_v40 = vmul.f32 %v1122_v36, %v1824_v29  ;;  %v660_v30 = vmul.f32 %v1122_v36, %v2563_v9  ;;  %v2241_v43 = vpop.eup %1131  ;;  %v2566_v38 = vld [vmem:[#allocation12_spill] sm:$0xff] }
 0x1c2   : > { %886 = vst [vmem:[%s2109_s4 + $0xe0] sm:$0xff] %v822_v8  ;;  %887 = vst [vmem:[%s2109_s4 + $0xe8] sm:$0xff] %v823_v63  ;;  %v661_v0 = vmul.f32 %v1122_v36, %v1958_v34  ;;  %v662_v5 = vmul.f32 %v1122_v36, %v1962_v3  ;;  %v740_v23 = vmul.f32 %v2071_v14, %v655_v7  ;;  %v2567_v8 = vld [vmem:[#allocation14_spill] sm:$0xff]  ;;  %v1134_v25 = vpop.eup %1133 }
 0x1c3   : > { %888 = vst [vmem:[%s2109_s4 + $0xf0] sm:$0xff] %v824_v45  ;;  %889 = vst [vmem:[%s2109_s4 + $0xf8] sm:$0xff] %v825_v12  ;;  %v741_v13 = vmul.f32 %v2073_v59, %v656_v2  ;;  %v742_v62 = vmul.f32 %v2075_v47, %v657_v55  ;;  %v743_v53 = vmul.f32 %v2077_v41, %v658_v15 }
 0x1c4   : > { %v744_v29 = vmul.f32 %v2071_v14, %v659_v40  ;;  %v745_v34 = vmul.f32 %v2073_v59, %v660_v30  ;;  %v746_v3 = vmul.f32 %v2075_v47, %v661_v0  ;;  %v747_v36 = vmul.f32 %v2077_v41, %v662_v5 }
 0x1c5   : > { %v826_v21 = vadd.f32 %v2079_v37, %v740_v23  ;;  %v827_v46 = vadd.f32 %v2081_v17, %v741_v13  ;;  %v828_v16 = vadd.f32 %v2083_v28, %v742_v62  ;;  %v829_v1 = vadd.f32 %v2085_v52, %v743_v53 }
 0x1c6   : > { %v830_v61 = vadd.f32 %v2079_v37, %v744_v29  ;;  %v831_v60 = vadd.f32 %v2081_v17, %v745_v34  ;;  %v832_v10 = vadd.f32 %v2083_v28, %v746_v3  ;;  %v833_v56 = vadd.f32 %v2085_v52, %v747_v36 }
 0x1c7   : > { %890 = vst [vmem:[%s2109_s4 + $0x100] sm:$0xff] %v826_v21  ;;  %891 = vst [vmem:[%s2109_s4 + $0x108] sm:$0xff] %v827_v46  ;;  %v663_v22 = vmul.f32 %v1124_v51, %v2564_v26  ;;  %v664_v39 = vmul.f32 %v1124_v51, %v2565_v48  ;;  %v665_v44 = vmul.f32 %v1124_v51, %v2566_v38  ;;  %v2569_v26 = vld [vmem:[#allocation22_spill] sm:$0xff]  ;;  %v2570_v48 = vld [vmem:[#allocation17_spill] sm:$0xff] }
 0x1c8   : > { %892 = vst [vmem:[%s2109_s4 + $0x110] sm:$0xff] %v828_v16  ;;  %893 = vst [vmem:[%s2109_s4 + $0x118] sm:$0xff] %v829_v1  ;;  %v666_v63 = vmul.f32 %v1124_v51, %v2567_v8  ;;  %v667_v45 = vmul.f32 %v2207_v57, %v1859_v6  ;;  %v668_v12 = vmul.f32 %v2207_v57, %v1863_v31  ;;  %v2571_v38 = vld [vmem:[#allocation19_spill] sm:$0xff] }
 0x1c9   : > { %894 = vst [vmem:[%s2109_s4 + $0x120] sm:$0xff] %v830_v61  ;;  %895 = vst [vmem:[%s2109_s4 + $0x128] sm:$0xff] %v831_v60  ;;  %v669_v7 = vmul.f32 %v2207_v57, %v1990_v19  ;;  %v670_v50 = vmul.f32 %v2207_v57, %v1994_v42  ;;  %v748_v2 = vmul.f32 %v2071_v14, %v663_v22 }
 0x1ca   : > { %896 = vst [vmem:[%s2109_s4 + $0x130] sm:$0xff] %v832_v10  ;;  %897 = vst [vmem:[%s2109_s4 + $0x138] sm:$0xff] %v833_v56  ;;  %v749_v51 = vmul.f32 %v2073_v59, %v664_v39  ;;  %v750_v18 = vmul.f32 %v2075_v47, %v665_v44  ;;  %v751_v6 = vmul.f32 %v2077_v41, %v666_v63  ;;  %v2568_v10 = vld [vmem:[#allocation41_spill] sm:$0xff] }
 0x1cb   : > { %v752_v31 = vmul.f32 %v2071_v14, %v667_v45  ;;  %v753_v55 = vmul.f32 %v2073_v59, %v668_v12  ;;  %v754_v19 = vmul.f32 %v2075_v47, %v669_v7  ;;  %v755_v42 = vmul.f32 %v2077_v41, %v670_v50 }
 0x1cc   : > { %v834_v57 = vadd.f32 %v2079_v37, %v748_v2  ;;  %v835_v24 = vadd.f32 %v2081_v17, %v749_v51  ;;  %v836_v15 = vadd.f32 %v2083_v28, %v750_v18  ;;  %v837_v40 = vadd.f32 %v2085_v52, %v751_v6  ;;  %v2572_v51 = vld [vmem:[#allocation39_spill] sm:$0xff]  ;;  %v2573_v6 = vld [vmem:[#allocation40_spill] sm:$0xff] }
 0x1cd   : > { %v838_v9 = vadd.f32 %v2079_v37, %v752_v31  ;;  %v839_v30 = vadd.f32 %v2081_v17, %v753_v55  ;;  %v840_v0 = vadd.f32 %v2083_v28, %v754_v19  ;;  %v841_v5 = vadd.f32 %v2085_v52, %v755_v42  ;;  %v2574_v55 = vld [vmem:[#allocation16_spill] sm:$0xff]  ;;  %v2575_v42 = vld [vmem:[#allocation18_spill] sm:$0xff] }
 0x1ce   : > { %898 = vst [vmem:[%s2109_s4 + $0x140] sm:$0xff] %v834_v57  ;;  %899 = vst [vmem:[%s2109_s4 + $0x148] sm:$0xff] %v835_v24  ;;  %v671_v23 = vmul.f32 %v2213_v35, %v1904_v4  ;;  %v672_v13 = vmul.f32 %v2213_v35, %v1908_v33  ;;  %v673_v62 = vmul.f32 %v2213_v35, %v2004_v58 }
 0x1cf   : > { %900 = vst [vmem:[%s2109_s4 + $0x150] sm:$0xff] %v836_v15  ;;  %901 = vst [vmem:[%s2109_s4 + $0x158] sm:$0xff] %v837_v40  ;;  %v674_v53 = vmul.f32 %v2213_v35, %v2010_v20  ;;  %v675_v29 = vmul.f32 %v2223_v32, %v1896_v54  ;;  %v676_v34 = vmul.f32 %v2223_v32, %v1900_v27 }
 0x1d0   : > { %902 = vst [vmem:[%s2109_s4 + $0x160] sm:$0xff] %v838_v9  ;;  %903 = vst [vmem:[%s2109_s4 + $0x168] sm:$0xff] %v839_v30  ;;  %v677_v4 = vmul.f32 %v2223_v32, %v2022_v11  ;;  %v678_v33 = vmul.f32 %v2223_v32, %v2026_v49  ;;  %v756_v58 = vmul.f32 %v2071_v14, %v671_v23 }
 0x1d1   : > { %904 = vst [vmem:[%s2109_s4 + $0x170] sm:$0xff] %v840_v0  ;;  %905 = vst [vmem:[%s2109_s4 + $0x178] sm:$0xff] %v841_v5  ;;  %v757_v20 = vmul.f32 %v2073_v59, %v672_v13  ;;  %v758_v35 = vmul.f32 %v2075_v47, %v673_v62  ;;  %v759_v54 = vmul.f32 %v2077_v41, %v674_v53 }
 0x1d2   : > { %v760_v27 = vmul.f32 %v2071_v14, %v675_v29  ;;  %v761_v3 = vmul.f32 %v2073_v59, %v676_v34  ;;  %v762_v11 = vmul.f32 %v2075_v47, %v677_v4  ;;  %v763_v49 = vmul.f32 %v2077_v41, %v678_v33 }
 0x1d3   : > { %v842_v32 = vadd.f32 %v2079_v37, %v756_v58  ;;  %v843_v36 = vadd.f32 %v2081_v17, %v757_v20  ;;  %v844_v21 = vadd.f32 %v2083_v28, %v758_v35  ;;  %v845_v46 = vadd.f32 %v2085_v52, %v759_v54 }
 0x1d4   : > { %v846_v16 = vadd.f32 %v2079_v37, %v760_v27  ;;  %v847_v1 = vadd.f32 %v2081_v17, %v761_v3  ;;  %v848_v61 = vadd.f32 %v2083_v28, %v762_v11  ;;  %v849_v60 = vadd.f32 %v2085_v52, %v763_v49 }
 0x1d5   : > { %906 = vst [vmem:[%s2109_s4 + $0x180] sm:$0xff] %v842_v32  ;;  %907 = vst [vmem:[%s2109_s4 + $0x188] sm:$0xff] %v843_v36  ;;  %v679_v56 = vmul.f32 %v2241_v43, %v2568_v10  ;;  %v680_v22 = vmul.f32 %v2241_v43, %v2569_v26  ;;  %v681_v39 = vmul.f32 %v2241_v43, %v2570_v48 }
 0x1d6   : > { %908 = vst [vmem:[%s2109_s4 + $0x190] sm:$0xff] %v844_v21  ;;  %909 = vst [vmem:[%s2109_s4 + $0x198] sm:$0xff] %v845_v46  ;;  %v682_v44 = vmul.f32 %v2241_v43, %v2571_v38  ;;  %v683_v18 = vmul.f32 %v1134_v25, %v2572_v51  ;;  %v684_v31 = vmul.f32 %v1134_v25, %v2573_v6 }
 0x1d7   : > { %910 = vst [vmem:[%s2109_s4 + $0x1a0] sm:$0xff] %v846_v16  ;;  %911 = vst [vmem:[%s2109_s4 + $0x1a8] sm:$0xff] %v847_v1  ;;  %v764_v8 = vmul.f32 %v2071_v14, %v679_v56  ;;  %v765_v63 = vmul.f32 %v2073_v59, %v680_v22  ;;  %v766_v45 = vmul.f32 %v2075_v47, %v681_v39 }
 0x1d8   : > { %912 = vst [vmem:[%s2109_s4 + $0x1b0] sm:$0xff] %v848_v61  ;;  %913 = vst [vmem:[%s2109_s4 + $0x1b8] sm:$0xff] %v849_v60  ;;  %v767_v12 = vmul.f32 %v2077_v41, %v682_v44  ;;  %v685_v19 = vmul.f32 %v1134_v25, %v2574_v55  ;;  %v686_v57 = vmul.f32 %v1134_v25, %v2575_v42 }
 0x1d9   : > { %v850_v43 = vadd.f32 %v2079_v37, %v764_v8  ;;  %v851_v7 = vadd.f32 %v2081_v17, %v765_v63  ;;  %v852_v50 = vadd.f32 %v2083_v28, %v766_v45  ;;  %v768_v24 = vmul.f32 %v2071_v14, %v683_v18 }
 0x1da   : > { %v853_v2 = vadd.f32 %v2085_v52, %v767_v12  ;;  %v769_v15 = vmul.f32 %v2073_v59, %v684_v31  ;;  %v770_v40 = vmul.f32 %v2075_v47, %v685_v19  ;;  %v771_v9 = vmul.f32 %v2077_v41, %v686_v57 }
 0x1db   : > { %914 = vst [vmem:[%s2109_s4 + $0x1c0] sm:$0xff] %v850_v43  ;;  %915 = vst [vmem:[%s2109_s4 + $0x1c8] sm:$0xff] %v851_v7  ;;  %v854_v30 = vadd.f32 %v2079_v37, %v768_v24 }
 0x1dc   : > { %916 = vst [vmem:[%s2109_s4 + $0x1d0] sm:$0xff] %v852_v50  ;;  %917 = vst [vmem:[%s2109_s4 + $0x1d8] sm:$0xff] %v853_v2  ;;  %v855_v14 = vadd.f32 %v2081_v17, %v769_v15  ;;  %v856_v59 = vadd.f32 %v2083_v28, %v770_v40  ;;  %v857_v47 = vadd.f32 %v2085_v52, %v771_v9 }
 0x1dd   : > { %918 = vst [vmem:[%s2109_s4 + $0x1e0] sm:$0xff] %v854_v30 }
 0x1de   : > { %919 = vst [vmem:[%s2109_s4 + $0x1e8] sm:$0xff] %v855_v14  ;;  %920 = vst [vmem:[%s2109_s4 + $0x1f0] sm:$0xff] %v856_v59 }
 0x1df   : > { %921 = vst [vmem:[%s2109_s4 + $0x1f8] sm:$0xff] %v857_v47 }
 0x1e0   : > { %1206 = shalt.err (!%p1203_p13)
}
 0x1e1   : > { %s1207_s8 = scalar_lea.hbm %s2377_s20, 8192  ;;  %s1211_s5 = scalar_lea.hbm %s2434_s3, 16384 }
 0x1e2   : > { %p1208_p7 = scmp.ne.s32.totalorder %s2377_s20, %s1207_s8  ;;  %p1212_p1 = scmp.lt.u32.totalorder %s2377_s20, %s2434_s3 }
 0x1e3   : > { %p1213_p11 = scmp.lt.u32.totalorder %s1211_s5, %s1207_s8  ;;  %p1215_p9 = scmp.lt.u32.totalorder %s1207_s8, %s2377_s20 }
 0x1e4   : > { %p1209_p3 = pnand %p1208_p7, %p2576_p10 }
 0x1e5   : > { %p1214_p8 = por %p1213_p11, %p1212_p1 }
 0x1e6   : > { %p1210_p12 = pneg %p1209_p3 }
 0x1e7   : > { %p1216_p2 = por %p1215_p9, %p1214_p8 }
 0x1e9   : > { %p1217_p4 = pnand %p1216_p2, %p1210_p12 }
 0x1eb   : > { %1220 = shalt.err (!%p1217_p4)
}
 0x1ec   : > { %s1270_s26 = smov 512   ;;  %s1271_s4 = smov 32  }
 0x1ed   : > { %1048 = dma.vmem_to_hbm [thread:$0]  (%p2576_p10), %s2379_s10, 8192, %s2377_s20, %s923_s16, %s1270_s26, %s1270_s26, %s1271_s4  }
 0x1ee PF: > { %s952_s7 = sand.u32 1, %s1251_s12   ;;  %p2577_p5 = scmp.ne.s32.totalorder %s2484_s25, 0 }
 0x1ef   : > { %p2578_p0 = scmp.ge.s32.totalorder %s1263_s15, 2  ;;  %s953_s29 = scalar_lea.sflag [#allocation4], %s952_s7 }
 0x1f1   : > { %p1059_p6 = pnand %p2578_p0, %p2577_p5 }
 0x1f3   : > { %1246 = dma.done.wait (!%p1059_p6), %s953_s29, 8192  }
 0x1f4   : > { %1248 = vsyncadd (!%p1059_p6), %s953_s29, 4294959104  ;;  %p17_p13 = scmp.ge.s32.totalorder %s1317_s18, 4   ;;  %s2579_s12 = smov %s1255_s13 }
 0x1f5   : > { %s2580_s13 = smov %s1259_s14  ;;  %s2581_s14 = smov %s1329_s21 }
 0x1f6   : > { %s2582_s15 = smov %s1317_s18  ;;  %19 = sbr.rel (!%p17_p13) target bundleno = 6 (0x6), region = 81 }
 0x1fd   :  { %958 = vsyncpa [#allocation3], 1 }
 0x1fe   :  { %960 = vsyncpa [#allocation3 + $0x1], 1 }
 0x1ff   :  { %961 = vsyncpa [#allocation6], 1 }
 0x200   :  { %962 = vsyncpa [#allocation4], 1 }
 0x201   :  { %964 = vsyncpa [#allocation4 + $0x1], 1 }

</bundles_post_ra>
